<compile_context>
chip_gen: v7x
topology: tpu7x:2x2x1
jax: 0.10.0
libtpu: 0.0.40
codegen_flags: <defaults>
</compile_context>

<pallas_src>
import functools

import jax
import jax.numpy as jnp
import numpy as np
from jax.experimental import pallas as pl
from jax.experimental.pallas import tpu as pltpu

HIDDEN = 256


def _temporal_attention_kernel(x_ref, w1_ref, b1_ref, w2_ref, b2_ref,
                               w3_ref, b3_ref, out_ref, *, seq_len, use_relu):
    act = (lambda v: jnp.maximum(v, 0.0)) if use_relu else jnp.tanh

    # Layer 1 (fc already folded into w1 by the wrapper): one full-depth matmul.
    a1 = act(jnp.dot(x_ref[...], w1_ref[...],
                     preferred_element_type=jnp.float32) + b1_ref[...])
    # Layer 2.
    a2 = act(jnp.dot(a1.astype(w2_ref.dtype), w2_ref[...],
                     preferred_element_type=jnp.float32) + b2_ref[...])
    # Layer 3 -> 128-lane padded logit slab.
    s = act(jnp.dot(a2.astype(w3_ref.dtype), w3_ref[...],
                    preferred_element_type=jnp.float32) + b3_ref[...])

    t_pad = out_ref.shape[-1]
    if seq_len < t_pad:
        # Mask padded lanes out of the softmax (exp(-inf) == 0).
        lane = jax.lax.broadcasted_iota(jnp.int32, s.shape, 1)
        s = jnp.where(lane < seq_len, s, -jnp.inf)
    if use_relu:
        # relu logits are unbounded above -> keep the shift for exp safety.
        s = s - jnp.max(s, axis=-1, keepdims=True)
    # tanh logits are bounded in [-1, 1]; exp is safe without the shift.
    e = jnp.exp(s)
    denom = jnp.sum(e, axis=-1, keepdims=True)
    out_ref[...] = e * pl.reciprocal(denom, approx=True)


def temporal_attention_forward(x, params, non_linearity="tanh"):
    """x: (B, T, A) float -> (B, T) attention scores (rows sum to 1)."""
    B, T, A = x.shape
    use_relu = (non_linearity == "relu")

    wfc = params["wfc"].astype(jnp.float32)                   # (A, 256)
    bfc = params["bfc"].reshape(HIDDEN).astype(jnp.float32)   # (256,)
    # NOTE: w1 is stored (fan_in=T*256, fan_out=256); a raw PyTorch nn.Linear
    # weight (out_features, in_features) would need a transpose first.
    w1 = params["w1"].reshape(T, HIDDEN, HIDDEN).astype(jnp.float32)
    b1 = params["b1"].reshape(1, HIDDEN).astype(jnp.float32)
    w2 = params["w2"].astype(jnp.float32)                     # (256, 256)
    b2 = params["b2"].reshape(1, HIDDEN).astype(jnp.float32)
    w3 = params["w3"].astype(jnp.float32)                     # (256, T)
    b3 = params["b3"].reshape(1, T).astype(jnp.float32)

    # --- fold fc + flatten into the first attention layer (once, in XLA) ---
    w1_fold = jnp.einsum("ah,thk->tak", wfc, w1).reshape(T * A, HIDDEN)
    b1_eff = b1 + jnp.einsum("h,thk->k", bfc, w1).reshape(1, HIDDEN)

    # --- lane-dense output: pad the last layer to a 128-lane slab ---
    t_pad = pl.cdiv(T, 128) * 128
    w3_p = jnp.pad(w3, ((0, 0), (0, t_pad - T)))
    b3_p = jnp.pad(b3, ((0, 0), (0, t_pad - T)))

    # --- batch tiling ---
    if B <= 8:
        block_b, b_pad = B, B            # single tiny block
    else:
        # >=2 parallel grid steps (feeds both v7x TCs), 8-sublane aligned,
        # capped at 256 rows to fill the 256-wide MXU on v6e/v7x.
        block_b = min(256, pl.cdiv(pl.cdiv(B, 2), 8) * 8)
        b_pad = pl.cdiv(B, block_b) * block_b

    x2d = x.astype(jnp.float32).reshape(B, T * A)   # row-major flatten: free
    if b_pad != B:
        x2d = jnp.pad(x2d, ((0, b_pad - B), (0, 0)))

    # bf16 matmul operands, f32 accumulation / biases / softmax.
    x2d = x2d.astype(jnp.bfloat16)
    w1_fold = w1_fold.astype(jnp.bfloat16)
    w2_b = w2.astype(jnp.bfloat16)
    w3_b = w3_p.astype(jnp.bfloat16)

    kern = functools.partial(_temporal_attention_kernel,
                             seq_len=T, use_relu=use_relu)

    out = pl.pallas_call(
        kern,
        out_shape=jax.ShapeDtypeStruct((b_pad, t_pad), jnp.float32),
        grid=(b_pad // block_b,),
        in_specs=[
            pl.BlockSpec((block_b, T * A), lambda i: (i, 0)),   # x (batch-tiled)
            pl.BlockSpec((T * A, HIDDEN), lambda i: (0, 0)),    # W1 (fc folded)
            pl.BlockSpec((1, HIDDEN), lambda i: (0, 0)),        # b1_eff
            pl.BlockSpec((HIDDEN, HIDDEN), lambda i: (0, 0)),   # W2
            pl.BlockSpec((1, HIDDEN), lambda i: (0, 0)),        # b2
            pl.BlockSpec((HIDDEN, t_pad), lambda i: (0, 0)),    # W3 (padded)
            pl.BlockSpec((1, t_pad), lambda i: (0, 0)),         # b3 (padded)
        ],
        out_specs=pl.BlockSpec((block_b, t_pad), lambda i: (i, 0)),
        compiler_params=pltpu.CompilerParams(
            dimension_semantics=("parallel",)),
    )(x2d, w1_fold, b1_eff, w2_b, b2, w3_b, b3_p)

    return out[:B, :T]


if __name__ == "__main__":
    key = jax.random.PRNGKey(0)
    ks = jax.random.split(key, 6)

    batch, seq_len, attention_size = 2, 8, 32

    x = jax.random.normal(ks[0], (batch, seq_len, attention_size), jnp.float32)

    def linear_init(k, fan_in, fan_out):
        kw, kb = jax.random.split(k)
        bound = 1.0 / float(np.sqrt(fan_in))
        w = jax.random.uniform(kw, (fan_in, fan_out), jnp.float32, -bound, bound)
        b = jax.random.uniform(kb, (fan_out,), jnp.float32, -bound, bound)
        return w, b

    wfc, bfc = linear_init(ks[1], attention_size, HIDDEN)
    w1, b1 = linear_init(ks[2], HIDDEN * seq_len, HIDDEN)
    w2, b2 = linear_init(ks[3], HIDDEN, HIDDEN)
    w3, b3 = linear_init(ks[4], HIDDEN, seq_len)

    params = dict(wfc=wfc, bfc=bfc, w1=w1, b1=b1, w2=w2, b2=b2, w3=w3, b3=b3)

    scores = temporal_attention_forward(x, params, non_linearity="tanh")
    scores = jax.block_until_ready(scores)

    # Pure-JAX (f32) reference of the PyTorch forward with the same parameters.
    h = jnp.einsum("bta,ah->bth", x, wfc) + bfc
    flat = h.reshape(batch, -1)
    a1 = jnp.tanh(flat @ w1 + b1)
    a2 = jnp.tanh(a1 @ w2 + b2)
    s = jnp.tanh(a2 @ w3 + b3)
    ref = jax.nn.softmax(s, axis=-1)

    assert scores.shape == (batch, seq_len)
    assert bool(jnp.all(jnp.isfinite(scores)))
    np.testing.assert_allclose(np.asarray(jnp.sum(scores, axis=-1)),
                               np.ones(batch, np.float32), atol=1e-3)
    # bf16 matmul operands (f32 accumulation) -> slightly looser than pure f32.
    np.testing.assert_allclose(np.asarray(scores), np.asarray(ref),
                               atol=5e-3, rtol=5e-3)
    print("KERNEL_OK")
</pallas_src>

<mosaic_0001>
module attributes {stable_mosaic.version = 11 : i64} {
  func.func @_temporal_attention_kernel(%arg0: i32, %arg1: memref<2x256xbf16, #tpu.memory_space<vmem>>, %arg2: memref<256x256xbf16, #tpu.memory_space<vmem>>, %arg3: memref<1x256xf32, #tpu.memory_space<vmem>>, %arg4: memref<256x256xbf16, #tpu.memory_space<vmem>>, %arg5: memref<1x256xf32, #tpu.memory_space<vmem>>, %arg6: memref<256x128xbf16, #tpu.memory_space<vmem>>, %arg7: memref<1x128xf32, #tpu.memory_space<vmem>>, %arg8: memref<2x128xf32, #tpu.memory_space<vmem>>) attributes {dimension_semantics = [#tpu.dimension_semantics<parallel>], iteration_bounds = array<i64: 1>, scalar_prefetch = 0 : i64, scratch_operands = 0 : i64, tpu.core_type = #tpu.core_type<tc>, window_params = [{transform_indices = @transform_0, window_bounds = array<i64: 2, 256>}, {pipeline_mode = #tpu.pipeline_mode<synchronous>, transform_indices = @transform_1, window_bounds = array<i64: 256, 256>}, {pipeline_mode = #tpu.pipeline_mode<synchronous>, transform_indices = @transform_2, window_bounds = array<i64: 1, 256>}, {pipeline_mode = #tpu.pipeline_mode<synchronous>, transform_indices = @transform_3, window_bounds = array<i64: 256, 256>}, {pipeline_mode = #tpu.pipeline_mode<synchronous>, transform_indices = @transform_4, window_bounds = array<i64: 1, 256>}, {pipeline_mode = #tpu.pipeline_mode<synchronous>, transform_indices = @transform_5, window_bounds = array<i64: 256, 128>}, {pipeline_mode = #tpu.pipeline_mode<synchronous>, transform_indices = @transform_6, window_bounds = array<i64: 1, 128>}, {transform_indices = @transform_7, window_bounds = array<i64: 2, 128>}]} {
    %c0 = arith.constant 0 : index
    %c0_0 = arith.constant 0 : index
    %0 = vector.load %arg1[%c0, %c0_0] : memref<2x256xbf16, #tpu.memory_space<vmem>>, vector<2x256xbf16>
    %c0_1 = arith.constant 0 : index
    %c0_2 = arith.constant 0 : index
    %1 = vector.load %arg2[%c0_1, %c0_2] : memref<256x256xbf16, #tpu.memory_space<vmem>>, vector<256x256xbf16>
    %cst = arith.constant dense<0.000000e+00> : vector<2x256xf32>
    %2 = tpu.matmul %0, %1, %cst {dimension_numbers = #tpu.dot_dimension_numbers<[1], [0], [0], [1], [0, 0, 1, 1], [], []>} : vector<2x256xbf16>, vector<256x256xbf16>, vector<2x256xf32> -> vector<2x256xf32>
    %c0_3 = arith.constant 0 : index
    %c0_4 = arith.constant 0 : index
    %3 = vector.load %arg3[%c0_3, %c0_4] : memref<1x256xf32, #tpu.memory_space<vmem>>, vector<1x256xf32>
    %4 = vector.broadcast %3 : vector<1x256xf32> to vector<2x256xf32>
    %5 = arith.addf %2, %4 : vector<2x256xf32>
    %6 = math.tanh %5 : vector<2x256xf32>
    %7 = arith.truncf %6 : vector<2x256xf32> to vector<2x256xbf16>
    %c0_5 = arith.constant 0 : index
    %c0_6 = arith.constant 0 : index
    %8 = vector.load %arg4[%c0_5, %c0_6] : memref<256x256xbf16, #tpu.memory_space<vmem>>, vector<256x256xbf16>
    %cst_7 = arith.constant dense<0.000000e+00> : vector<2x256xf32>
    %9 = tpu.matmul %7, %8, %cst_7 {dimension_numbers = #tpu.dot_dimension_numbers<[1], [0], [0], [1], [0, 0, 1, 1], [], []>} : vector<2x256xbf16>, vector<256x256xbf16>, vector<2x256xf32> -> vector<2x256xf32>
    %c0_8 = arith.constant 0 : index
    %c0_9 = arith.constant 0 : index
    %10 = vector.load %arg5[%c0_8, %c0_9] : memref<1x256xf32, #tpu.memory_space<vmem>>, vector<1x256xf32>
    %11 = vector.broadcast %10 : vector<1x256xf32> to vector<2x256xf32>
    %12 = arith.addf %9, %11 : vector<2x256xf32>
    %13 = math.tanh %12 : vector<2x256xf32>
    %14 = arith.truncf %13 : vector<2x256xf32> to vector<2x256xbf16>
    %c0_10 = arith.constant 0 : index
    %c0_11 = arith.constant 0 : index
    %15 = vector.load %arg6[%c0_10, %c0_11] : memref<256x128xbf16, #tpu.memory_space<vmem>>, vector<256x128xbf16>
    %cst_12 = arith.constant dense<0.000000e+00> : vector<2x128xf32>
    %16 = tpu.matmul %14, %15, %cst_12 {dimension_numbers = #tpu.dot_dimension_numbers<[1], [0], [0], [1], [0, 0, 1, 1], [], []>} : vector<2x256xbf16>, vector<256x128xbf16>, vector<2x128xf32> -> vector<2x128xf32>
    %c0_13 = arith.constant 0 : index
    %c0_14 = arith.constant 0 : index
    %17 = vector.load %arg7[%c0_13, %c0_14] : memref<1x128xf32, #tpu.memory_space<vmem>>, vector<1x128xf32>
    %18 = vector.broadcast %17 : vector<1x128xf32> to vector<2x128xf32>
    %19 = arith.addf %16, %18 : vector<2x128xf32>
    %20 = math.tanh %19 : vector<2x128xf32>
    %21 = tpu.iota {dimensions = array<i32: 1>} : vector<2x128xi32>
    %c8_i32 = arith.constant 8 : i32
    %22 = vector.broadcast %c8_i32 : i32 to vector<2x128xi32>
    %23 = arith.cmpi slt, %21, %22 : vector<2x128xi32>
    %cst_15 = arith.constant 0xFF800000 : f32
    %24 = vector.broadcast %cst_15 : f32 to vector<2x128xf32>
    %25 = arith.select %23, %20, %24 : vector<2x128xi1>, vector<2x128xf32>
    %26 = math.exp %25 : vector<2x128xf32>
    %cst_16 = arith.constant dense<0.000000e+00> : vector<2xf32>
    %27 = vector.multi_reduction <add>, %26, %cst_16 [1] : vector<2x128xf32> to vector<2xf32>
    %28 = vector.shape_cast %27 : vector<2xf32> to vector<2x1xf32>
    %29 = tpu.reciprocal %28 {approx = true} : vector<2x1xf32> -> vector<2x1xf32>
    %30 = vector.broadcast %29 : vector<2x1xf32> to vector<2x128xf32>
    %31 = arith.mulf %26, %30 : vector<2x128xf32>
    %c0_17 = arith.constant 0 : index
    %c0_18 = arith.constant 0 : index
    %32 = vector.load %arg8[%c0_17, %c0_18] : memref<2x128xf32, #tpu.memory_space<vmem>>, vector<2x128xf32>
    tpu.vector_store %arg8[%c0_17, %c0_18], %31 {strides = array<i32>} : memref<2x128xf32, #tpu.memory_space<vmem>>, vector<2x128xf32>,
    return
  }
  func.func @transform_0(%arg0: i32) -> (i32, i32) {
    %c0_i32 = arith.constant 0 : i32
    %c0_i32_0 = arith.constant 0 : i32
    return %arg0, %c0_i32 : i32, i32
  }
  func.func @transform_1(%arg0: i32) -> (i32, i32) {
    %c0_i32 = arith.constant 0 : i32
    %c0_i32_0 = arith.constant 0 : i32
    %c0_i32_1 = arith.constant 0 : i32
    return %c0_i32, %c0_i32_0 : i32, i32
  }
  func.func @transform_2(%arg0: i32) -> (i32, i32) {
    %c0_i32 = arith.constant 0 : i32
    %c0_i32_0 = arith.constant 0 : i32
    %c0_i32_1 = arith.constant 0 : i32
    return %c0_i32, %c0_i32_0 : i32, i32
  }
  func.func @transform_3(%arg0: i32) -> (i32, i32) {
    %c0_i32 = arith.constant 0 : i32
    %c0_i32_0 = arith.constant 0 : i32
    %c0_i32_1 = arith.constant 0 : i32
    return %c0_i32, %c0_i32_0 : i32, i32
  }
  func.func @transform_4(%arg0: i32) -> (i32, i32) {
    %c0_i32 = arith.constant 0 : i32
    %c0_i32_0 = arith.constant 0 : i32
    %c0_i32_1 = arith.constant 0 : i32
    return %c0_i32, %c0_i32_0 : i32, i32
  }
  func.func @transform_5(%arg0: i32) -> (i32, i32) {
    %c0_i32 = arith.constant 0 : i32
    %c0_i32_0 = arith.constant 0 : i32
    %c0_i32_1 = arith.constant 0 : i32
    return %c0_i32, %c0_i32_0 : i32, i32
  }
  func.func @transform_6(%arg0: i32) -> (i32, i32) {
    %c0_i32 = arith.constant 0 : i32
    %c0_i32_0 = arith.constant 0 : i32
    %c0_i32_1 = arith.constant 0 : i32
    return %c0_i32, %c0_i32_0 : i32, i32
  }
  func.func @transform_7(%arg0: i32) -> (i32, i32) {
    %c0_i32 = arith.constant 0 : i32
    %c0_i32_0 = arith.constant 0 : i32
    return %arg0, %c0_i32 : i32, i32
  }
}

</mosaic_0001>

<bundles_post_ra>
// kernel: tpu_custom_call.1
= control target key start
LH: loop header
LB: loop body
LE: loop exit
PB: predicated region body
PF: predicated region fallthrough
CT: control target
= control target key end

     0   :  { %12 = vsyncpa [#allocation3], 0  ;;  %s1310_s0 = inlined_call_operand.hbm [shape: bf16[2,256], index: 0, kind: input, shape index: {}]   ;;  %s1311_s1 = inlined_call_operand.hbm [shape: bf16[256,256], index: 1, kind: input, shape index: {}]   ;;  %s1312_s2 = inlined_call_operand.vmem [shape: f32[1,256], index: 2, kind: input, shape index: {}]   ;;  %s1313_s3 = inlined_call_operand.hbm [shape: bf16[256,256], index: 3, kind: input, shape index: {}]   ;;  %s1314_s4 = inlined_call_operand.vmem [shape: f32[1,256], index: 4, kind: input, shape index: {}]   ;;  %s1315_s5 = inlined_call_operand.hbm [shape: bf16[256,128], index: 5, kind: input, shape index: {}]   ;;  %s1316_s6 = inlined_call_operand.vmem [shape: f32[1,128], index: 6, kind: input, shape index: {}]   ;;  %s1317_s7 = inlined_call_operand.hbm [shape: f32[2,128], index: 7, kind: output, shape index: {}]  }
   0x1   :  { %13 = vsyncpa [#allocation6], 0 }
   0x2   :  { %14 = vsyncpa [#allocation9], 0 }
   0x3   :  { %15 = vsyncpa [#allocation4], 0  ;;  %s1169_s24 = smov [#allocation5]   ;;  %s1051_s28 = scalar_lea.hbm %s1311_s1, 4096 }
   0x4   :  { %s31_s25 = sshll.u32 %s1169_s24, 4  ;;  %p1052_p0 = scmp.ne.s32.totalorder %s1311_s1, %s1051_s28  ;;  %s32_s25 = int_to_ptr.vmem [resolvable:$true] %s31_s25 }
   0x5   :  { %p1055_p1 = scmp.lt.u32.totalorder %s1051_s28, %s1311_s1 }
   0x7   :  { %p1057_p2 = pnand %p1055_p1, %p1052_p0 }
   0x9   :  { %1060 = shalt.err (!%p1057_p2)
}
   0xa   :  { %s1061_s10 = scalar_lea.vmem %s32_s25, 4096  ;;  %p1066_p4 = scmp.lt.s32.totalorder %s32_s25, %s32_s25 }
   0xb   :  { %p1062_p3 = scmp.ne.s32.totalorder %s32_s25, %s1061_s10  ;;  %p1067_p5 = scmp.lt.s32.totalorder %s1061_s10, %s1061_s10 }
   0xd   :  { %p1068_p6 = por %p1067_p5, %p1066_p4 }
   0xf   :  { %p1069_p7 = pnand %p1068_p6, %p1062_p3 }
  0x11   :  { %1072 = shalt.err (!%p1069_p7)
}
  0x12   :  { %s1170_s11 = smov 128   ;;  %s1171_s12 = smov 8  }
  0x13   :  { %37 = dma.hbm_to_vmem [thread:$0]  %s1311_s1, 4096, %s32_s25, [#allocation6], %s1170_s11, %s1170_s11, %s1171_s12  }
  0x14   :  { %s1172_s15 = smov [#allocation2]   ;;  %s1173_s17 = smov [#allocation7]  }
  0x15   :  { %s22_s16 = sshll.u32 %s1172_s15, 4  ;;  %s45_s18 = sshll.u32 %s1173_s17, 4  ;;  %s23_s16 = int_to_ptr.vmem [resolvable:$true] %s22_s16  ;;  %s46_s18 = int_to_ptr.vmem [resolvable:$true] %s45_s18 }
  0x16   :  { %s1073_s21 = scalar_lea.hbm %s1310_s0, 32 }
  0x17   :  { %p1074_p8 = scmp.ne.s32.totalorder %s1310_s0, %s1073_s21  ;;  %p1077_p9 = scmp.lt.u32.totalorder %s1073_s21, %s1310_s0 }
  0x19   :  { %p1079_p10 = pnand %p1077_p9, %p1074_p8 }
  0x1b   :  { %1082 = shalt.err (!%p1079_p10)
}
  0x1c   :  { %s1083_s1 = scalar_lea.vmem %s23_s16, 32  ;;  %p1088_p12 = scmp.lt.s32.totalorder %s23_s16, %s23_s16 }
  0x1d   :  { %p1084_p11 = scmp.ne.s32.totalorder %s23_s16, %s1083_s1  ;;  %p1089_p13 = scmp.lt.s32.totalorder %s1083_s1, %s1083_s1 }
  0x1f   :  { %p1090_p0 = por %p1089_p13, %p1088_p12 }
  0x21   :  { %p1091_p1 = pnand %p1090_p0, %p1084_p11 }
  0x23   :  { %1094 = shalt.err (!%p1091_p1)
}
  0x24   :  { %25 = dma.hbm_to_vmem [thread:$0]  %s1310_s0, 32, %s23_s16, [#allocation3]  }
  0x25   :  { %s1095_s30 = scalar_lea.hbm %s1313_s3, 4096 }
  0x26   :  { %p1096_p2 = scmp.ne.s32.totalorder %s1313_s3, %s1095_s30  ;;  %p1099_p3 = scmp.lt.u32.totalorder %s1095_s30, %s1313_s3 }
  0x28   :  { %p1101_p4 = pnand %p1099_p3, %p1096_p2 }
  0x2a   :  { %1104 = shalt.err (!%p1101_p4)
}
  0x2b   :  { %s1105_s14 = scalar_lea.vmem %s46_s18, 4096  ;;  %p1110_p6 = scmp.lt.s32.totalorder %s46_s18, %s46_s18 }
  0x2c   :  { %p1106_p5 = scmp.ne.s32.totalorder %s46_s18, %s1105_s14  ;;  %p1111_p7 = scmp.lt.s32.totalorder %s1105_s14, %s1105_s14 }
  0x2e   :  { %p1112_p8 = por %p1111_p7, %p1110_p6 }
  0x30   :  { %p1113_p9 = pnand %p1112_p8, %p1106_p5 }
  0x32   :  { %1116 = shalt.err (!%p1113_p9)
}
  0x33   :  { %51 = dma.hbm_to_vmem [thread:$0]  %s1313_s3, 4096, %s46_s18, [#allocation6], %s1170_s11, %s1170_s11, %s1171_s12  }
  0x34   :  { %s1174_s16 = smov [#allocation8]   ;;  %s1117_s21 = scalar_lea.hbm %s1315_s5, 2048 }
  0x35   :  { %s59_s17 = sshll.u32 %s1174_s16, 4  ;;  %p1118_p10 = scmp.ne.s32.totalorder %s1315_s5, %s1117_s21  ;;  %s60_s17 = int_to_ptr.vmem [resolvable:$true] %s59_s17 }
  0x36   :  { %p1121_p11 = scmp.lt.u32.totalorder %s1117_s21, %s1315_s5 }
  0x38   :  { %p1123_p12 = pnand %p1121_p11, %p1118_p10 }
  0x3a   :  { %1126 = shalt.err (!%p1123_p12)
}
  0x3b   :  { %s1127_s1 = scalar_lea.vmem %s60_s17, 2048  ;;  %p1132_p0 = scmp.lt.s32.totalorder %s60_s17, %s60_s17 }
  0x3c   :  { %p1128_p13 = scmp.ne.s32.totalorder %s60_s17, %s1127_s1  ;;  %p1133_p1 = scmp.lt.s32.totalorder %s1127_s1, %s1127_s1 }
  0x3e   :  { %p1134_p2 = por %p1133_p1, %p1132_p0 }
  0x40   :  { %p1135_p3 = pnand %p1134_p2, %p1128_p13 }
  0x42   :  { %1138 = shalt.err (!%p1135_p3)
}
  0x43   :  { %s1175_s3 = smov 64   ;;  %s1176_s11 = smov 4  }
  0x44   :  { %65 = dma.hbm_to_vmem [thread:$0]  %s1315_s5, 2048, %s60_s17, [#allocation9], %s1175_s3, %s1175_s3, %s1176_s11  }
  0x45   :  { %1161 = dma.done.wait [#allocation3], 32  }
  0x46   :  { %1162 = vsyncadd [#allocation3], 4294967264 }
  0x47   :  { %1163 = dma.done.wait [#allocation6], 8192  }
  0x48   :  { %1164 = vsyncadd [#allocation6], 4294959104 }
  0x49   :  { %1165 = dma.done.wait [#allocation9], 2048  }
  0x4a   :  { %1166 = vsyncadd [#allocation9], 4294965248  ;;  %v925_v0 = vld [vmem:[#allocation5 + $0x4] ss:$8 sps:$4 sm:$0xff]   ;;  %v927_v1 = vld [vmem:[#allocation5] ss:$8 sps:$4 sm:$0xff]   ;;  %v116_v9 = vlaneseq }
  0x4b   :  { %311 = vmatprep.subr.bf16.mxu0 %v925_v0  ;;  %v928_v2 = vld [vmem:[#allocation5 + $0x14] ss:$8 sps:$4 sm:$0xff]   ;;  %v930_v3 = vld [vmem:[#allocation5 + $0x10] ss:$8 sps:$4 sm:$0xff]   ;;  %v931_v4 = vld [vmem:[#allocation5 + $0x24] ss:$8 sps:$4 sm:$0xff]  }
  0x4c   :  { %312 = vmatpush1.bf16.msra.mxu0 %v927_v1  ;;  %v933_v5 = vld [vmem:[#allocation5 + $0x20] ss:$8 sps:$4 sm:$0xff]   ;;  %v934_v6 = vld [vmem:[#allocation5 + $0x34] ss:$8 sps:$4 sm:$0xff]   ;;  %v936_v7 = vld [vmem:[#allocation5 + $0x30] ss:$8 sps:$4 sm:$0xff]  }
  0x4d   :  { %313 = vmatprep.subr.bf16.mxu0 %v928_v2  ;;  %v937_v8 = vld [vmem:[#allocation5 + $0x44] ss:$8 sps:$4 sm:$0xff]   ;;  %v1177_v10 = vmov 1966171168   ;;  %v939_v12 = vld [vmem:[#allocation5 + $0x40] ss:$8 sps:$4 sm:$0xff]  }
  0x4e   :  { %v136_v11 = vunpack.c.l.s4 %v1177_v10  ;;  %v940_v13 = vld [vmem:[#allocation5 + $0x54] ss:$8 sps:$4 sm:$0xff]   ;;  %v1274_v14 = vshrl.u32 %v116_v9, 7  ;;  %v942_v16 = vld [vmem:[#allocation5 + $0x50] ss:$8 sps:$4 sm:$0xff]   ;;  %vm787_vm1 = vcmask 1041408  }
  0x4f   :  { %v943_v17 = vld [vmem:[#allocation5 + $0x64] ss:$8 sps:$4 sm:$0xff]   ;;  %v945_v19 = vld [vmem:[#allocation5 + $0x60] ss:$8 sps:$4 sm:$0xff]   ;;  %v946_v24 = vld [vmem:[#allocation5 + $0x74] ss:$8 sps:$4 sm:$0xff]  }
  0x50   :  { %314 = vmatpush1.bf16.msra.mxu0 %v930_v3  ;;  %v137_v15 = vunpack.c.0.s8 %v136_v11  ;;  %v1279_v20 = vld.sshfl [vmem:[#allocation2] sm:$0x11 pattern:$0x75316420]  ;;  %v973_v22 = vld [vmem:[#allocation7 + $0x4] ss:$8 sps:$4 sm:$0xff]  }
  0x51   :  { %315 = vmatprep.subr.bf16.mxu0 %v931_v4  ;;  %v134_v21 = vcombine.high %v1279_v20, %v1279_v20  ;;  %v975_v23 = vld [vmem:[#allocation7] ss:$8 sps:$4 sm:$0xff]   ;;  %560 = vmatprep.subr.bf16.mxu1 %v973_v22  ;;  %v976_v26 = vld [vmem:[#allocation7 + $0x14] ss:$8 sps:$4 sm:$0xff]   ;;  %v978_v27 = vld [vmem:[#allocation7 + $0x10] ss:$8 sps:$4 sm:$0xff]  }
  0x52   :  { %v1277_v18 = vsub.s32 %v137_v15, %v1274_v14  ;;  %561 = vmatpush1.bf16.msra.mxu1 %v975_v23  ;;  %v979_v28 = vld [vmem:[#allocation7 + $0x24] ss:$8 sps:$4 sm:$0xff]   ;;  %v948_v29 = vld [vmem:[#allocation5 + $0x70] ss:$8 sps:$4 sm:$0xff]   ;;  %v981_v31 = vld [vmem:[#allocation7 + $0x20] ss:$8 sps:$4 sm:$0xff]  }
  0x53   :  { %562 = vmatprep.subr.bf16.mxu1 %v976_v26  ;;  %v949_v30 = vld [vmem:[#allocation5 + $0x84] ss:$8 sps:$4 sm:$0xff]   ;;  %v982_v32 = vld [vmem:[#allocation7 + $0x34] ss:$8 sps:$4 sm:$0xff]   ;;  %v951_v33 = vld [vmem:[#allocation5 + $0x80] ss:$8 sps:$4 sm:$0xff]  }
  0x54   :  { %316 = vmatpush1.bf16.msra.mxu0 %v933_v5  ;;  %v148_v25 = vrot.slane %v134_v21, %v1277_v18  ;;  %v952_v34 = vld [vmem:[#allocation5 + $0x94] ss:$8 sps:$4 sm:$0xff]   ;;  %v984_v35 = vld [vmem:[#allocation7 + $0x30] ss:$8 sps:$4 sm:$0xff]   ;;  %v985_v36 = vld [vmem:[#allocation7 + $0x44] ss:$8 sps:$4 sm:$0xff]   ;;  %v141_v63 = vrot.slane %v1279_v20, %v1277_v18 }
  0x55   :  { %317 = vmatprep.subr.bf16.mxu0 %v934_v6  ;;  %v954_v37 = vld [vmem:[#allocation5 + $0x90] ss:$8 sps:$4 sm:$0xff]   ;;  %v955_v38 = vld [vmem:[#allocation5 + $0xa4] ss:$8 sps:$4 sm:$0xff]   ;;  %v957_v39 = vld [vmem:[#allocation5 + $0xa0] ss:$8 sps:$4 sm:$0xff]  }
  0x56   :  { %343 = vmatprep.mubr.bf16.mxu0 %v148_v25  ;;  %563 = vmatpush1.bf16.msra.mxu1 %v978_v27  ;;  %v987_v40 = vld [vmem:[#allocation7 + $0x40] ss:$8 sps:$4 sm:$0xff]   ;;  %v958_v41 = vld [vmem:[#allocation5 + $0xb4] ss:$8 sps:$4 sm:$0xff]   ;;  %v990_v43 = vld [vmem:[#allocation7 + $0x50] ss:$8 sps:$4 sm:$0xff]  }
  0x57   :  { %564 = vmatprep.subr.bf16.mxu1 %v979_v28  ;;  %v988_v42 = vld [vmem:[#allocation7 + $0x54] ss:$8 sps:$4 sm:$0xff]   ;;  %v991_v44 = vld [vmem:[#allocation7 + $0x64] ss:$8 sps:$4 sm:$0xff]   ;;  %v960_v45 = vld [vmem:[#allocation5 + $0xb0] ss:$8 sps:$4 sm:$0xff]  }
  0x58   :  { %318 = vmatpush1.bf16.msra.mxu0 %v936_v7  ;;  %v961_v46 = vld [vmem:[#allocation5 + $0xc4] ss:$8 sps:$4 sm:$0xff]   ;;  %v993_v47 = vld [vmem:[#allocation7 + $0x60] ss:$8 sps:$4 sm:$0xff]   ;;  %v994_v48 = vld [vmem:[#allocation7 + $0x74] ss:$8 sps:$4 sm:$0xff]  }
  0x59   :  { %319 = vmatprep.subr.bf16.mxu0 %v937_v8  ;;  %v963_v49 = vld [vmem:[#allocation5 + $0xc0] ss:$8 sps:$4 sm:$0xff]   ;;  %v964_v50 = vld [vmem:[#allocation5 + $0xd4] ss:$8 sps:$4 sm:$0xff]   ;;  %v996_v51 = vld [vmem:[#allocation7 + $0x70] ss:$8 sps:$4 sm:$0xff]  }
  0x5a   :  { %565 = vmatpush1.bf16.msra.mxu1 %v981_v31  ;;  %v997_v52 = vld [vmem:[#allocation7 + $0x84] ss:$8 sps:$4 sm:$0xff]   ;;  %v966_v53 = vld [vmem:[#allocation5 + $0xd0] ss:$8 sps:$4 sm:$0xff]   ;;  %v999_v55 = vld [vmem:[#allocation7 + $0x80] ss:$8 sps:$4 sm:$0xff]  }
  0x5b   :  { %566 = vmatprep.subr.bf16.mxu1 %v982_v32  ;;  %v967_v54 = vld [vmem:[#allocation5 + $0xe4] ss:$8 sps:$4 sm:$0xff]   ;;  %v1000_v56 = vld [vmem:[#allocation7 + $0x94] ss:$8 sps:$4 sm:$0xff]   ;;  %v969_v57 = vld [vmem:[#allocation5 + $0xe0] ss:$8 sps:$4 sm:$0xff]  }
  0x5c   :  { %320 = vmatpush1.bf16.msra.mxu0 %v939_v12  ;;  %v970_v58 = vld [vmem:[#allocation5 + $0xf4] ss:$8 sps:$4 sm:$0xff]   ;;  %v1002_v59 = vld [vmem:[#allocation7 + $0x90] ss:$8 sps:$4 sm:$0xff]   ;;  %v1003_v60 = vld [vmem:[#allocation7 + $0xa4] ss:$8 sps:$4 sm:$0xff]  }
  0x5d   :  { %321 = vmatprep.subr.bf16.mxu0 %v940_v13  ;;  %v972_v61 = vld [vmem:[#allocation5 + $0xf0] ss:$8 sps:$4 sm:$0xff]   ;;  %v1005_v62 = vld [vmem:[#allocation7 + $0xa0] ss:$8 sps:$4 sm:$0xff]   ;;  %v1006_v0 = vld [vmem:[#allocation7 + $0xb4] ss:$8 sps:$4 sm:$0xff]  }
  0x5e   :  { %567 = vmatpush1.bf16.msra.mxu1 %v984_v35  ;;  %v1008_v1 = vld [vmem:[#allocation7 + $0xb0] ss:$8 sps:$4 sm:$0xff]   ;;  %v1009_v2 = vld [vmem:[#allocation7 + $0xc4] ss:$8 sps:$4 sm:$0xff]   ;;  %v1011_v3 = vld [vmem:[#allocation7 + $0xc0] ss:$8 sps:$4 sm:$0xff]  }
  0x5f   :  { %568 = vmatprep.subr.bf16.mxu1 %v985_v36  ;;  %v1012_v4 = vld [vmem:[#allocation7 + $0xd4] ss:$8 sps:$4 sm:$0xff]   ;;  %v1014_v5 = vld [vmem:[#allocation7 + $0xd0] ss:$8 sps:$4 sm:$0xff]   ;;  %v1015_v6 = vld [vmem:[#allocation7 + $0xe4] ss:$8 sps:$4 sm:$0xff]  }
  0x60   :  { %322 = vmatpush1.bf16.msra.mxu0 %v942_v16  ;;  %v1017_v7 = vld [vmem:[#allocation7 + $0xe0] ss:$8 sps:$4 sm:$0xff]   ;;  %v1018_v8 = vld [vmem:[#allocation7 + $0xf4] ss:$8 sps:$4 sm:$0xff]   ;;  %v1020_v10 = vld [vmem:[#allocation7 + $0xf0] ss:$8 sps:$4 sm:$0xff]  }
  0x61   :  { %323 = vmatprep.subr.bf16.mxu0 %v943_v17  ;;  %v1021_v11 = vld [vmem:[#allocation8 + $0x40] sm:$0xff]   ;;  %v1023_v13 = vld [vmem:[#allocation8 + $0x48] sm:$0xff]   ;;  %v1025_v16 = vld [vmem:[#allocation8 + $0x50] sm:$0xff]   ;;  %v118_v20 = vsub.s32 0, %v1274_v14  ;;  %v122_v22 = vsub.s32 1, %v1274_v14 }
  0x62   :  { %569 = vmatpush1.bf16.msra.mxu1 %v987_v40  ;;  %v1022_v12 = vld [vmem:[#allocation8] sm:$0xff]   ;;  %v1024_v15 = vld [vmem:[#allocation8 + $0x8] sm:$0xff]   ;;  %v1026_v17 = vld [vmem:[#allocation8 + $0x10] sm:$0xff]  }
  0x63   :  { %570 = vmatprep.subr.bf16.mxu1 %v988_v42  ;;  %v1027_v18 = vld [vmem:[#allocation8 + $0x58] sm:$0xff]   ;;  %v1029_v35 = vld [vmem:[#allocation8 + $0x60] sm:$0xff]   ;;  %v1031_v14 = vld [vmem:[#allocation8 + $0x68] sm:$0xff]  }
  0x64   :  { %324 = vmatpush1.bf16.msra.mxu0 %v945_v19  ;;  %v1028_v19 = vld [vmem:[#allocation8 + $0x18] sm:$0xff]   ;;  %v1030_v36 = vld [vmem:[#allocation8 + $0x20] sm:$0xff]  }
  0x65   :  { %325 = vmatprep.subr.bf16.mxu0 %v946_v24  ;;  %v114_v21 = vld [vmem:[%s1312_s2] sm:$0x3] }
  0x66   :  { %571 = vmatpush1.bf16.msra.mxu1 %v990_v43  ;;  %v119_v23 = vrot.slane %v114_v21, %v118_v20  ;;  %v123_v24 = vrot.slane %v114_v21, %v122_v22  ;;  %v1035_v40 = vld [vmem:[#allocation8 + $0x78] sm:$0xff]  }
  0x67   :  { %572 = vmatprep.subr.bf16.mxu1 %v991_v44  ;;  %v388_v42 = vld [vmem:[%s1314_s4] sm:$0x3]  ;;  %s1178_s4 = smov [#allocation10]  }
  0x68   :  { %326 = vmatpush1.bf16.msra.mxu0 %v948_v29  ;;  %v393_v43 = vrot.slane %v388_v42, %v118_v20  ;;  %v397_v44 = vrot.slane %v388_v42, %v122_v22 }
  0x69   :  { %327 = vmatprep.subr.bf16.mxu0 %v949_v30 }
  0x6a   :  { %573 = vmatpush1.bf16.msra.mxu1 %v993_v47 }
  0x6b   :  { %574 = vmatprep.subr.bf16.mxu1 %v994_v48 }
  0x6c   :  { %328 = vmatpush1.bf16.msra.mxu0 %v951_v33 }
  0x6d   :  { %329 = vmatprep.subr.bf16.mxu0 %v952_v34 }
  0x6e   :  { %575 = vmatpush1.bf16.msra.mxu1 %v996_v51 }
  0x6f   :  { %576 = vmatprep.subr.bf16.mxu1 %v997_v52 }
  0x70   :  { %330 = vmatpush1.bf16.msra.mxu0 %v954_v37  ;;  %v1032_v37 = vld [vmem:[#allocation8 + $0x28] sm:$0xff]  }
  0x71   :  { %331 = vmatprep.subr.bf16.mxu0 %v955_v38  ;;  %v1033_v38 = vld [vmem:[#allocation8 + $0x70] sm:$0xff]  }
  0x72   :  { %577 = vmatpush1.bf16.msra.mxu1 %v999_v55 }
  0x73   :  { %578 = vmatprep.subr.bf16.mxu1 %v1000_v56  ;;  %v876_v56 = vld [vmem:[%s1316_s6] ss:$0 sm:$0xff]  ;;  %s800_s6 = sshll.u32 %s1178_s4, 4  ;;  %s801_s6 = int_to_ptr.vmem [resolvable:$true] %s800_s6 }
  0x74   :  { %332 = vmatpush1.bf16.msra.mxu0 %v957_v39  ;;  %v1034_v39 = vld [vmem:[#allocation8 + $0x30] sm:$0xff]   ;;  %s1139_s30 = scalar_lea.vmem %s801_s6, 32  ;;  %p1144_p5 = scmp.lt.s32.totalorder %s801_s6, %s801_s6 }
  0x75   :  { %333 = vmatprep.subr.bf16.mxu0 %v958_v41  ;;  %v1036_v41 = vld [vmem:[#allocation8 + $0x38] sm:$0xff]   ;;  %p1140_p4 = scmp.ne.s32.totalorder %s801_s6, %s1139_s30  ;;  %p1145_p6 = scmp.lt.s32.totalorder %s1139_s30, %s1139_s30 }
  0x76   :  { %579 = vmatpush1.bf16.msra.mxu1 %v1002_v59 }
  0x77   :  { %580 = vmatprep.subr.bf16.mxu1 %v1003_v60  ;;  %p1146_p7 = por %p1145_p6, %p1144_p5 }
  0x78   :  { %334 = vmatpush1.bf16.msra.mxu0 %v960_v45 }
  0x79   :  { %335 = vmatprep.subr.bf16.mxu0 %v961_v46  ;;  %p1147_p8 = pnand %p1146_p7, %p1140_p4 }
  0x7a   :  { %581 = vmatpush1.bf16.msra.mxu1 %v1005_v62  ;;  %v782_v62 = vand.u32 127, %v116_v9 }
  0x7b   :  { %582 = vmatprep.subr.bf16.mxu1 %v1006_v0 }
  0x7c   :  { %336 = vmatpush1.bf16.msra.mxu0 %v963_v49  ;;  %vm783_vm0 = vcmp.lt.s32.totalorder %v782_v62, 8 }
  0x7d   :  { %337 = vmatprep.subr.bf16.mxu0 %v964_v50 }
  0x7e   :  { %583 = vmatpush1.bf16.msra.mxu1 %v1008_v1 }
  0x7f   :  { %584 = vmatprep.subr.bf16.mxu1 %v1009_v2 }
  0x80   :  { %338 = vmatpush1.bf16.msra.mxu0 %v966_v53 }
  0x81   :  { %339 = vmatprep.subr.bf16.mxu0 %v967_v54 }
  0x82   :  { %585 = vmatpush1.bf16.msra.mxu1 %v1011_v3 }
  0x83   :  { %586 = vmatprep.subr.bf16.mxu1 %v1012_v4 }
  0x84   :  { %340 = vmatpush1.bf16.msra.mxu0 %v969_v57 }
  0x85   :  { %341 = vmatprep.subr.bf16.mxu0 %v970_v58 }
  0x86   :  { %587 = vmatpush1.bf16.msra.mxu1 %v1014_v5 }
  0x87   :  { %588 = vmatprep.subr.bf16.mxu1 %v1015_v6 }
  0x88   :  { %342 = vmatpush1.bf16.msra.mxu0 %v972_v61 }
  0x89   :  { %893 = vmatprep.subr.bf16.mxu0 %v1021_v11 }
  0x8a   :  { %589 = vmatpush1.bf16.msra.mxu1 %v1017_v7 }
  0x8b   :  { %344 = vmatmul.mubr.bf16.vlgmr.msra.gmra.mrb[0].mxu0 %v141_v63  ;;  %590 = vmatprep.subr.bf16.mxu1 %v1018_v8 }
  0x8c   :  { %894 = vmatpush3.bf16.msra.mxu0 %v1022_v12 }
  0x8d   :  { %895 = vmatprep.subr.bf16.mxu0 %v1023_v13 }
  0x8e   :  { %591 = vmatpush1.bf16.msra.mxu1 %v1020_v10 }
  0x90   :  { %896 = vmatpush3.bf16.msra.mxu0 %v1024_v15 }
  0x91   :  { %897 = vmatprep.subr.bf16.mxu0 %v1025_v16 }
  0x94   :  { %898 = vmatpush3.bf16.msra.mxu0 %v1026_v17 }
  0x95   :  { %899 = vmatprep.subr.bf16.mxu0 %v1027_v18 }
  0x98   :  { %900 = vmatpush3.bf16.msra.mxu0 %v1028_v19 }
  0x99   :  { %901 = vmatprep.subr.bf16.mxu0 %v1029_v35 }
  0x9c   :  { %902 = vmatpush3.bf16.msra.mxu0 %v1030_v36 }
  0x9d   :  { %903 = vmatprep.subr.bf16.mxu0 %v1031_v14 }
  0xa0   :  { %904 = vmatpush3.bf16.msra.mxu0 %v1032_v37 }
  0xa1   :  { %905 = vmatprep.subr.bf16.mxu0 %v1033_v38 }
  0xa4   :  { %906 = vmatpush3.bf16.msra.mxu0 %v1034_v39 }
  0xa5   :  { %907 = vmatprep.subr.bf16.mxu0 %v1035_v40 }
  0xa8   :  { %908 = vmatpush3.bf16.msra.mxu0 %v1036_v41 }
 0x15e   :  { %v345_v25 = vpop.f32.mrb[0].mxu0 }
 0x15f   :  { %v346_v26 = vadd.f32 %v345_v25, %v119_v23  ;;  %v347_v27 = vpop.f32.mrb[1].mxu0 }
 0x160   :  { %v348_v28 = vadd.f32 %v347_v27, %v123_v24  ;;  %v349_v29 = vpop.f32.mrb[2].mxu0 }
 0x161   :  { %1037 = vtanh.f32 %v346_v26  ;;  %v350_v30 = vpop.f32.mrb[3].mxu0 }
 0x162   :  { %1039 = vtanh.f32 %v348_v28 }
 0x16b   :  { %v1038_v31 = vpop.eup %1037 }
 0x16c   :  { %v1040_v32 = vpop.eup %1039  ;;  %v354_v34 = vpack.c.bf16 %v1038_v31, %v1038_v31 }
 0x16d   :  { %v355_v33 = vpack.c.bf16 %v1040_v32, %v1040_v32 }
 0x16f   :  { %592 = vmatprep.mubr.bf16.mxu1 %v355_v33 }
 0x170   :  { %593 = vmatmul.mubr.bf16.vlgmr.msra.gmra.mrb[0].mxu1 %v354_v34 }
 0x243   :  { %v594_v45 = vpop.f32.mrb[0].mxu1 }
 0x244   :  { %v595_v46 = vadd.f32 %v594_v45, %v393_v43  ;;  %v596_v47 = vpop.f32.mrb[1].mxu1 }
 0x245   :  { %v597_v48 = vadd.f32 %v596_v47, %v397_v44  ;;  %v598_v49 = vpop.f32.mrb[2].mxu1 }
 0x246   :  { %1041 = vtanh.f32 %v595_v46  ;;  %v599_v50 = vpop.f32.mrb[3].mxu1 }
 0x247   :  { %1043 = vtanh.f32 %v597_v48 }
 0x250   :  { %v1042_v51 = vpop.eup %1041 }
 0x251   :  { %v1044_v52 = vpop.eup %1043  ;;  %v603_v54 = vpack.c.bf16 %v1042_v51, %v1042_v51 }
 0x252   :  { %v604_v53 = vpack.c.bf16 %v1044_v52, %v1044_v52 }
 0x254   :  { %772 = vmatprep.mubr.bf16.mxu0 %v604_v53 }
 0x255   :  { %773 = vmatmul.mubr.bf16.vlgmr.msra.gmra.mrb[4].mxu0 %v603_v54 }
 0x328   :  { %v909_v55 = vpop.f32.mrb[4].mxu0 }
 0x329   :  { %v910_v57 = vpop.f32.mrb[5].mxu0 }
 0x32a   :  { %v911_v58 = vadd.f32 %v910_v57, %v909_v55  ;;  %v912_v59 = vpop.f32.mrb[6].mxu0 }
 0x32b   :  { %v913_v60 = vpop.f32.mrb[7].mxu0 }
 0x32c   :  { %v775_v61 = vadd.f32 %v911_v58, %v876_v56 }
 0x32e   :  { %1045 = vtanh.f32 %v775_v61 }
 0x338   :  { %v1046_v63 = vpop.eup %1045 }
 0x339   :  { %v784_v0 = vsel %vm783_vm0, %v1046_v63, -inf }
 0x33a   :  { %v785_v1 = vmul.f32 1.442695, %v784_v0 }
 0x33c   :  { %1047 = vpow2.f32 %v785_v1 }
 0x346   :  { %v1048_v2 = vpop.eup %1047 }
 0x347   :  { %v788_v3 = vsel %vm787_vm1, %v1048_v2, 0.0 }
 0x348   :  { %789 = vadd.xlane.f32.xlu0 %v788_v3 }
 0x3d5   :  { %v790_v4 = vpop.xlane.xlu0 %789 }
 0x3d6   :  { %1049 = vrcp.f32 %v790_v4 }
 0x3e0   :  { %v1050_v5 = vpop.eup %1049 }
 0x3e1   :  { %v792_v6 = vmul.f32 %v1050_v5, %v1048_v2 }
 0x3e3   :  { %793 = vst [vmem:[#allocation10] sm:$0x3] %v792_v6 }
 0x3e4   :  { %1150 = shalt.err (!%p1147_p8)
}
 0x3e5   :  { %s1151_s10 = scalar_lea.hbm %s1317_s7, 32 }
 0x3e6   :  { %p1152_p9 = scmp.ne.s32.totalorder %s1317_s7, %s1151_s10  ;;  %p1155_p10 = scmp.lt.u32.totalorder %s1151_s10, %s1317_s7 }
 0x3e8   :  { %p1157_p11 = pnand %p1155_p10, %p1152_p9 }
 0x3ea   :  { %1160 = shalt.err (!%p1157_p11)
}
 0x3eb   :  { %803 = dma.vmem_to_hbm [thread:$0]  %s801_s6, 32, %s1317_s7, [#allocation4]  }
 0x3ec   :  { %1167 = dma.done.wait [#allocation4], 32  }
 0x3ed   :  { %1168 = vsyncadd [#allocation4], 4294967264 }
 0x3ee   :  { %807 = vsyncpa [#allocation3], 1 }
 0x3ef   :  { %808 = vsyncpa [#allocation6], 1 }
 0x3f0   :  { %809 = vsyncpa [#allocation9], 1 }
 0x3f1   :  { %810 = vsyncpa [#allocation4], 1 }

</bundles_post_ra>
